<compile_context>
chip_gen: v6e
topology: v6e:2x2x1
jax: 0.10.0
libtpu: 0.0.40
codegen_flags: <defaults>
</compile_context>

<pallas_src>
import math
import functools

import jax
import jax.numpy as jnp
from jax.experimental import pallas as pl
from jax.experimental.pallas import tpu as pltpu

LOG_STD_MAX = 2.0
LOG_STD_MIN = -20.0
LOG_2PI = math.log(2.0 * math.pi)
LOG_2 = math.log(2.0)
LANE = 128


def _round_up(x, m):
    return ((x + m - 1) // m) * m


def _softplus(x):
    # numerically stable softplus
    return jnp.maximum(x, 0.0) + jnp.log1p(jnp.exp(-jnp.abs(x)))


def _actor_math(x, eps, w1, b1, w2, b2, wh, bh, *, action_dim, out_width):
    """Shared forward math.  eps=None -> deterministic (u = mu)."""
    # a_net: Linear -> ReLU -> Linear -> ReLU (o_acti defaults to ReLU)
    h1 = jnp.maximum(jnp.dot(x, w1, preferred_element_type=jnp.float32) + b1, 0.0)
    h2 = jnp.maximum(jnp.dot(h1, w2, preferred_element_type=jnp.float32) + b2, 0.0)

    # Fused mu|log_std head: one MXU push instead of two.
    head = jnp.dot(h2, wh, preferred_element_type=jnp.float32) + bh
    mu = head[:, :action_dim]
    log_std = jnp.clip(head[:, action_dim:2 * action_dim], LOG_STD_MIN, LOG_STD_MAX)

    if eps is None:
        u = mu
        # z = (u - mu)/std == 0
        gauss_lp = -log_std - 0.5 * LOG_2PI
    else:
        std = jnp.exp(log_std)
        u = mu + std * eps                    # rsample: mu + std * N(0,1)
        # z = (u - mu)/std == eps exactly -> no reciprocal needed
        gauss_lp = -0.5 * eps * eps - log_std - 0.5 * LOG_2PI

    a = jnp.tanh(u)

    # tanh squashing correction: 2*(log2 - u - softplus(-2u))
    corr = 2.0 * (LOG_2 - u - _softplus(-2.0 * u))
    logp = jnp.sum(gauss_lp - corr, axis=1, keepdims=True)

    # Pack into a lane-dense (TILE_B, out_width) slab: [a | logp | 0 ... 0]
    pad = out_width - action_dim - 1
    zeros = jnp.zeros((a.shape[0], pad), jnp.float32)
    return jnp.concatenate([a, logp, zeros], axis=1)


def _actor_kernel_stoch(state_ref, eps_ref, w1_ref, b1_ref, w2_ref, b2_ref,
                        wh_ref, bh_ref, out_ref, *, action_dim, out_width):
    out_ref[...] = _actor_math(
        state_ref[...], eps_ref[...],
        w1_ref[...], b1_ref[...], w2_ref[...], b2_ref[...],
        wh_ref[...], bh_ref[...],
        action_dim=action_dim, out_width=out_width)


def _actor_kernel_det(state_ref, w1_ref, b1_ref, w2_ref, b2_ref,
                      wh_ref, bh_ref, out_ref, *, action_dim, out_width):
    out_ref[...] = _actor_math(
        state_ref[...], None,
        w1_ref[...], b1_ref[...], w2_ref[...], b2_ref[...],
        wh_ref[...], bh_ref[...],
        action_dim=action_dim, out_width=out_width)


def actor_forward(state, eps, params, deterministic=False, tile_b=128):
    """Run the Actor forward pass.  Returns (a:(B,A), logp:(B,1))."""
    B, state_dim = state.shape
    action_dim = params["wmu"].shape[1]

    # Fuse head weights/biases once on the host side of the call.
    wh = jnp.concatenate([params["wmu"], params["wls"]], axis=1)   # (H, 2A)
    bh = jnp.concatenate([params["bmu"], params["bls"]], axis=1)   # (1, 2A)

    out_width = max(LANE, _round_up(action_dim + 1, LANE))

    # Batch tiling (multiple of 8 sublanes); pad B if needed.
    TILE_B = _round_up(min(tile_b, _round_up(B, 8)), 8)
    Bp = _round_up(B, TILE_B)
    if Bp != B:
        state = jnp.pad(state, ((0, Bp - B), (0, 0)))
        if not deterministic:
            eps = jnp.pad(eps, ((0, Bp - B), (0, 0)))
    nb = Bp // TILE_B

    def const_spec(arr):
        return pl.BlockSpec(arr.shape, lambda i: (0, 0))   # VMEM-resident weight

    def row_spec(dim):
        return pl.BlockSpec((TILE_B, dim), lambda i: (i, 0))

    weight_specs = [
        const_spec(params["w1"]), const_spec(params["b1"]),
        const_spec(params["w2"]), const_spec(params["b2"]),
        const_spec(wh), const_spec(bh),
    ]

    if deterministic:
        kernel = functools.partial(_actor_kernel_det,
                                   action_dim=action_dim, out_width=out_width)
        in_specs = [row_spec(state_dim)] + weight_specs
        args = (state, params["w1"], params["b1"], params["w2"], params["b2"], wh, bh)
    else:
        kernel = functools.partial(_actor_kernel_stoch,
                                   action_dim=action_dim, out_width=out_width)
        in_specs = [row_spec(state_dim), row_spec(action_dim)] + weight_specs
        args = (state, eps, params["w1"], params["b1"], params["w2"], params["b2"], wh, bh)

    packed = pl.pallas_call(
        kernel,
        out_shape=jax.ShapeDtypeStruct((Bp, out_width), jnp.float32),
        grid_spec=pltpu.PrefetchScalarGridSpec(
            num_scalar_prefetch=0,
            grid=(nb,),
            in_specs=in_specs,
            out_specs=pl.BlockSpec((TILE_B, out_width), lambda i: (i, 0)),
        ),
        compiler_params=pltpu.CompilerParams(
            dimension_semantics=("parallel",)),
    )(*args)

    a = packed[:B, :action_dim]
    logp = packed[:B, action_dim:action_dim + 1]
    return a, logp


def init_params(key, state_dim, hid_shape, action_dim):
    """Deterministic init mimicking nn.Linear's U(-1/sqrt(fan_in), 1/sqrt(fan_in))."""
    dims = [state_dim] + list(hid_shape)
    params = {}
    keys = jax.random.split(key, 8)

    def lin(kw, kb, fin, fout):
        bound = 1.0 / math.sqrt(fin)
        w = jax.random.uniform(kw, (fin, fout), jnp.float32, -bound, bound)
        b = jax.random.uniform(kb, (1, fout), jnp.float32, -bound, bound)
        return w, b

    params["w1"], params["b1"] = lin(keys[0], keys[1], dims[0], dims[1])
    params["w2"], params["b2"] = lin(keys[2], keys[3], dims[1], dims[2])
    params["wmu"], params["bmu"] = lin(keys[4], keys[5], dims[2], action_dim)
    params["wls"], params["bls"] = lin(keys[6], keys[7], dims[2], action_dim)
    return params


def actor_reference(state, eps, params, deterministic=False):
    """Pure-JAX reference mirroring the PyTorch module."""
    h1 = jnp.maximum(state @ params["w1"] + params["b1"], 0.0)
    h2 = jnp.maximum(h1 @ params["w2"] + params["b2"], 0.0)
    mu = h2 @ params["wmu"] + params["bmu"]
    log_std = jnp.clip(h2 @ params["wls"] + params["bls"], LOG_STD_MIN, LOG_STD_MAX)
    std = jnp.exp(log_std)
    u = mu if deterministic else mu + std * eps
    a = jnp.tanh(u)
    logp = jnp.sum(-0.5 * ((u - mu) / std) ** 2 - log_std - 0.5 * LOG_2PI,
                   axis=1, keepdims=True)
    logp = logp - jnp.sum(2.0 * (LOG_2 - u - jax.nn.softplus(-2.0 * u)),
                          axis=1, keepdims=True)
    return a, logp


if __name__ == "__main__":
    key = jax.random.PRNGKey(0)
    k_param, k_state, k_eps = jax.random.split(key, 3)

    batch = 8
    state_dim = 16
    hid_shape = (32, 32)
    action_dim = 4

    params = init_params(k_param, state_dim, hid_shape, action_dim)
    state = jax.random.normal(k_state, (batch, state_dim), jnp.float32)
    eps = jax.random.normal(k_eps, (batch, action_dim), jnp.float32)

    # Stochastic path
    a, logp = actor_forward(state, eps, params, deterministic=False)
    jax.block_until_ready((a, logp))
    a_ref, logp_ref = actor_reference(state, eps, params, deterministic=False)
    assert jnp.allclose(a, a_ref, atol=1e-5), "action mismatch (stochastic)"
    assert jnp.allclose(logp, logp_ref, atol=1e-4), "logp mismatch (stochastic)"

    # Deterministic path (no eps operand / DMA)
    a_d, logp_d = actor_forward(state, None, params, deterministic=True)
    jax.block_until_ready((a_d, logp_d))
    a_dr, logp_dr = actor_reference(state, eps, params, deterministic=True)
    assert jnp.allclose(a_d, a_dr, atol=1e-5), "action mismatch (deterministic)"
    assert jnp.allclose(logp_d, logp_dr, atol=1e-4), "logp mismatch (deterministic)"

    print("KERNEL_OK")
</pallas_src>

<mosaic_0001>
module attributes {stable_mosaic.version = 11 : i64} {
  func.func @_actor_kernel_stoch(%arg0: i32, %arg1: memref<8x16xf32, #tpu.memory_space<vmem>>, %arg2: memref<8x4xf32, #tpu.memory_space<vmem>>, %arg3: memref<16x32xf32, #tpu.memory_space<vmem>>, %arg4: memref<1x32xf32, #tpu.memory_space<vmem>>, %arg5: memref<32x32xf32, #tpu.memory_space<vmem>>, %arg6: memref<1x32xf32, #tpu.memory_space<vmem>>, %arg7: memref<32x8xf32, #tpu.memory_space<vmem>>, %arg8: memref<1x8xf32, #tpu.memory_space<vmem>>, %arg9: memref<8x128xf32, #tpu.memory_space<vmem>>) attributes {dimension_semantics = [#tpu.dimension_semantics<parallel>], iteration_bounds = array<i64: 1>, scalar_prefetch = 0 : i64, scratch_operands = 0 : i64, tpu.core_type = #tpu.core_type<tc>, window_params = [{transform_indices = @transform_0, window_bounds = array<i64: 8, 16>}, {transform_indices = @transform_1, window_bounds = array<i64: 8, 4>}, {pipeline_mode = #tpu.pipeline_mode<synchronous>, transform_indices = @transform_2, window_bounds = array<i64: 16, 32>}, {pipeline_mode = #tpu.pipeline_mode<synchronous>, transform_indices = @transform_3, window_bounds = array<i64: 1, 32>}, {pipeline_mode = #tpu.pipeline_mode<synchronous>, transform_indices = @transform_4, window_bounds = array<i64: 32, 32>}, {pipeline_mode = #tpu.pipeline_mode<synchronous>, transform_indices = @transform_5, window_bounds = array<i64: 1, 32>}, {pipeline_mode = #tpu.pipeline_mode<synchronous>, transform_indices = @transform_6, window_bounds = array<i64: 32, 8>}, {pipeline_mode = #tpu.pipeline_mode<synchronous>, transform_indices = @transform_7, window_bounds = array<i64: 1, 8>}, {transform_indices = @transform_8, window_bounds = array<i64: 8, 128>}]} {
    %c0 = arith.constant 0 : index
    %c0_0 = arith.constant 0 : index
    %0 = vector.load %arg1[%c0, %c0_0] : memref<8x16xf32, #tpu.memory_space<vmem>>, vector<8x16xf32>
    %c0_1 = arith.constant 0 : index
    %c0_2 = arith.constant 0 : index
    %1 = vector.load %arg2[%c0_1, %c0_2] : memref<8x4xf32, #tpu.memory_space<vmem>>, vector<8x4xf32>
    %c0_3 = arith.constant 0 : index
    %c0_4 = arith.constant 0 : index
    %2 = vector.load %arg3[%c0_3, %c0_4] : memref<16x32xf32, #tpu.memory_space<vmem>>, vector<16x32xf32>
    %c0_5 = arith.constant 0 : index
    %c0_6 = arith.constant 0 : index
    %3 = vector.load %arg4[%c0_5, %c0_6] : memref<1x32xf32, #tpu.memory_space<vmem>>, vector<1x32xf32>
    %c0_7 = arith.constant 0 : index
    %c0_8 = arith.constant 0 : index
    %4 = vector.load %arg5[%c0_7, %c0_8] : memref<32x32xf32, #tpu.memory_space<vmem>>, vector<32x32xf32>
    %c0_9 = arith.constant 0 : index
    %c0_10 = arith.constant 0 : index
    %5 = vector.load %arg6[%c0_9, %c0_10] : memref<1x32xf32, #tpu.memory_space<vmem>>, vector<1x32xf32>
    %c0_11 = arith.constant 0 : index
    %c0_12 = arith.constant 0 : index
    %6 = vector.load %arg7[%c0_11, %c0_12] : memref<32x8xf32, #tpu.memory_space<vmem>>, vector<32x8xf32>
    %c0_13 = arith.constant 0 : index
    %c0_14 = arith.constant 0 : index
    %7 = vector.load %arg8[%c0_13, %c0_14] : memref<1x8xf32, #tpu.memory_space<vmem>>, vector<1x8xf32>
    %cst = arith.constant dense<0.000000e+00> : vector<8x32xf32>
    %8 = tpu.matmul %0, %2, %cst {dimension_numbers = #tpu.dot_dimension_numbers<[1], [0], [0], [1], [0, 0, 1, 1], [], []>} : vector<8x16xf32>, vector<16x32xf32>, vector<8x32xf32> -> vector<8x32xf32>
    %9 = vector.broadcast %3 : vector<1x32xf32> to vector<8x32xf32>
    %10 = arith.addf %8, %9 : vector<8x32xf32>
    %cst_15 = arith.constant 0.000000e+00 : f32
    %11 = vector.broadcast %cst_15 : f32 to vector<8x32xf32>
    %12 = arith.maximumf %10, %11 : vector<8x32xf32>
    %cst_16 = arith.constant dense<0.000000e+00> : vector<8x32xf32>
    %13 = tpu.matmul %12, %4, %cst_16 {dimension_numbers = #tpu.dot_dimension_numbers<[1], [0], [0], [1], [0, 0, 1, 1], [], []>} : vector<8x32xf32>, vector<32x32xf32>, vector<8x32xf32> -> vector<8x32xf32>
    %14 = vector.broadcast %5 : vector<1x32xf32> to vector<8x32xf32>
    %15 = arith.addf %13, %14 : vector<8x32xf32>
    %cst_17 = arith.constant 0.000000e+00 : f32
    %16 = vector.broadcast %cst_17 : f32 to vector<8x32xf32>
    %17 = arith.maximumf %15, %16 : vector<8x32xf32>
    %cst_18 = arith.constant dense<0.000000e+00> : vector<8x8xf32>
    %18 = tpu.matmul %17, %6, %cst_18 {dimension_numbers = #tpu.dot_dimension_numbers<[1], [0], [0], [1], [0, 0, 1, 1], [], []>} : vector<8x32xf32>, vector<32x8xf32>, vector<8x8xf32> -> vector<8x8xf32>
    %19 = vector.broadcast %7 : vector<1x8xf32> to vector<8x8xf32>
    %20 = arith.addf %18, %19 : vector<8x8xf32>
    %21 = vector.extract_strided_slice %20 {offsets = [0, 0], sizes = [8, 4], strides = [1, 1]} : vector<8x8xf32> to vector<8x4xf32>
    %22 = vector.extract_strided_slice %20 {offsets = [0, 4], sizes = [8, 4], strides = [1, 1]} : vector<8x8xf32> to vector<8x4xf32>
    %cst_19 = arith.constant -2.000000e+01 : f32
    %cst_20 = arith.constant 2.000000e+00 : f32
    %23 = vector.broadcast %cst_19 : f32 to vector<8x4xf32>
    %24 = arith.maximumf %23, %22 : vector<8x4xf32>
    %25 = vector.broadcast %cst_20 : f32 to vector<8x4xf32>
    %26 = arith.minimumf %25, %24 : vector<8x4xf32>
    %27 = math.exp %26 : vector<8x4xf32>
    %28 = arith.mulf %27, %1 : vector<8x4xf32>
    %29 = arith.addf %21, %28 : vector<8x4xf32>
    %cst_21 = arith.constant -5.000000e-01 : f32
    %30 = vector.broadcast %cst_21 : f32 to vector<8x4xf32>
    %31 = arith.mulf %30, %1 : vector<8x4xf32>
    %32 = arith.mulf %31, %1 : vector<8x4xf32>
    %33 = arith.subf %32, %26 : vector<8x4xf32>
    %cst_22 = arith.constant 0.918938517 : f32
    %34 = vector.broadcast %cst_22 : f32 to vector<8x4xf32>
    %35 = arith.subf %33, %34 : vector<8x4xf32>
    %36 = math.tanh %29 : vector<8x4xf32>
    %cst_23 = arith.constant 0.693147182 : f32
    %37 = vector.broadcast %cst_23 : f32 to vector<8x4xf32>
    %38 = arith.subf %37, %29 : vector<8x4xf32>
    %cst_24 = arith.constant -2.000000e+00 : f32
    %39 = vector.broadcast %cst_24 : f32 to vector<8x4xf32>
    %40 = arith.mulf %39, %29 : vector<8x4xf32>
    %cst_25 = arith.constant 0.000000e+00 : f32
    %41 = vector.broadcast %cst_25 : f32 to vector<8x4xf32>
    %42 = arith.maximumf %40, %41 : vector<8x4xf32>
    %43 = math.absf %40 : vector<8x4xf32>
    %cst_26 = arith.constant 0.000000e+00 : f32
    %44 = vector.broadcast %cst_26 : f32 to vector<8x4xf32>
    %45 = arith.subf %44, %43 : vector<8x4xf32>
    %46 = math.exp %45 : vector<8x4xf32>
    %47 = math.log1p %46 : vector<8x4xf32>
    %48 = arith.addf %42, %47 : vector<8x4xf32>
    %49 = arith.subf %38, %48 : vector<8x4xf32>
    %cst_27 = arith.constant 2.000000e+00 : f32
    %50 = vector.broadcast %cst_27 : f32 to vector<8x4xf32>
    %51 = arith.mulf %50, %49 : vector<8x4xf32>
    %52 = arith.subf %35, %51 : vector<8x4xf32>
    %cst_28 = arith.constant dense<0.000000e+00> : vector<8xf32>
    %53 = vector.multi_reduction <add>, %52, %cst_28 [1] : vector<8x4xf32> to vector<8xf32>
    %54 = vector.shape_cast %53 : vector<8xf32> to vector<8x1xf32>
    %cst_29 = arith.constant 0.000000e+00 : f32
    %55 = vector.broadcast %cst_29 : f32 to vector<8x123xf32>
    %56 = tpu.concatenate %36, %54, %55 in 1 : vector<8x4xf32>, vector<8x1xf32>, vector<8x123xf32> -> vector<8x128xf32>
    %c0_30 = arith.constant 0 : index
    %c0_31 = arith.constant 0 : index
    %57 = vector.load %arg9[%c0_30, %c0_31] : memref<8x128xf32, #tpu.memory_space<vmem>>, vector<8x128xf32>
    tpu.vector_store %arg9[%c0_30, %c0_31], %56 {strides = array<i32>} : memref<8x128xf32, #tpu.memory_space<vmem>>, vector<8x128xf32>,
    return
  }
  func.func @transform_0(%arg0: i32) -> (i32, i32) {
    %c0_i32 = arith.constant 0 : i32
    %c0_i32_0 = arith.constant 0 : i32
    return %arg0, %c0_i32 : i32, i32
  }
  func.func @transform_1(%arg0: i32) -> (i32, i32) {
    %c0_i32 = arith.constant 0 : i32
    %c0_i32_0 = arith.constant 0 : i32
    return %arg0, %c0_i32 : i32, i32
  }
  func.func @transform_2(%arg0: i32) -> (i32, i32) {
    %c0_i32 = arith.constant 0 : i32
    %c0_i32_0 = arith.constant 0 : i32
    %c0_i32_1 = arith.constant 0 : i32
    return %c0_i32, %c0_i32_0 : i32, i32
  }
  func.func @transform_3(%arg0: i32) -> (i32, i32) {
    %c0_i32 = arith.constant 0 : i32
    %c0_i32_0 = arith.constant 0 : i32
    %c0_i32_1 = arith.constant 0 : i32
    return %c0_i32, %c0_i32_0 : i32, i32
  }
  func.func @transform_4(%arg0: i32) -> (i32, i32) {
    %c0_i32 = arith.constant 0 : i32
    %c0_i32_0 = arith.constant 0 : i32
    %c0_i32_1 = arith.constant 0 : i32
    return %c0_i32, %c0_i32_0 : i32, i32
  }
  func.func @transform_5(%arg0: i32) -> (i32, i32) {
    %c0_i32 = arith.constant 0 : i32
    %c0_i32_0 = arith.constant 0 : i32
    %c0_i32_1 = arith.constant 0 : i32
    return %c0_i32, %c0_i32_0 : i32, i32
  }
  func.func @transform_6(%arg0: i32) -> (i32, i32) {
    %c0_i32 = arith.constant 0 : i32
    %c0_i32_0 = arith.constant 0 : i32
    %c0_i32_1 = arith.constant 0 : i32
    return %c0_i32, %c0_i32_0 : i32, i32
  }
  func.func @transform_7(%arg0: i32) -> (i32, i32) {
    %c0_i32 = arith.constant 0 : i32
    %c0_i32_0 = arith.constant 0 : i32
    %c0_i32_1 = arith.constant 0 : i32
    return %c0_i32, %c0_i32_0 : i32, i32
  }
  func.func @transform_8(%arg0: i32) -> (i32, i32) {
    %c0_i32 = arith.constant 0 : i32
    %c0_i32_0 = arith.constant 0 : i32
    return %arg0, %c0_i32 : i32, i32
  }
}

</mosaic_0001>

<bundles_post_ra>
// kernel: tpu_custom_call.1
= control target key start
LH: loop header
LB: loop body
LE: loop exit
PB: predicated region body
PF: predicated region fallthrough
CT: control target
= control target key end

     0   :  { %13 = vsyncpa [#allocation3], 0  ;;  %s575_s0 = inlined_call_operand.hbm [shape: f32[8,16], index: 0, kind: input, shape index: {}]   ;;  %s576_s1 = inlined_call_operand.vmem [shape: f32[8,4], index: 1, kind: input, shape index: {}]   ;;  %s577_s2 = inlined_call_operand.vmem [shape: f32[16,32], index: 2, kind: input, shape index: {}]   ;;  %s578_s3 = inlined_call_operand.vmem [shape: f32[1,32], index: 3, kind: input, shape index: {}]   ;;  %s579_s4 = inlined_call_operand.vmem [shape: f32[32,32], index: 4, kind: input, shape index: {}]   ;;  %s580_s5 = inlined_call_operand.vmem [shape: f32[1,32], index: 5, kind: input, shape index: {}]   ;;  %s581_s6 = inlined_call_operand.vmem [shape: f32[32,8], index: 6, kind: input, shape index: {}]   ;;  %s582_s7 = inlined_call_operand.vmem [shape: f32[1,8], index: 7, kind: input, shape index: {}]   ;;  %s583_s8 = inlined_call_operand.hbm [shape: f32[8,128], index: 8, kind: output, shape index: {}]  }
   0x1   :  { %14 = vsyncpa [#allocation4], 0  ;;  %s471_s27 = smov [#allocation2]  }
   0x2   :  { %s21_s28 = sshll.u32 %s471_s27, 4  ;;  %s22_s28 = int_to_ptr.vmem [resolvable:$true] %s21_s28 }
   0x3   :  { %s435_s29 = scalar_lea.vmem %s22_s28, 128  ;;  %p440_p1 = scmp.lt.s32.totalorder %s22_s28, %s22_s28 }
   0x4   :  { %p436_p0 = scmp.ne.s32.totalorder %s22_s28, %s435_s29  ;;  %p441_p2 = scmp.lt.s32.totalorder %s435_s29, %s435_s29 }
   0x6   :  { %p442_p3 = por %p441_p2, %p440_p1 }
   0x8   :  { %p443_p4 = pnand %p442_p3, %p436_p0 }
   0xa   :  { %446 = shalt.err (!%p443_p4)
}
   0xb   :  { %24 = dma.hbm_to_vmem [thread:$0]  %s575_s0, 128, %s22_s28, [#allocation3]  }
   0xc   :  { %467 = dma.done.wait [#allocation3], 128  }
   0xd   :  { %468 = vsyncadd [#allocation3], 4294967168  ;;  %v472_v0 = vmov 0.0   ;;  %vm473_vm0 = vmmov 0   ;;  %v45_v1 = vld [vmem:[%s577_s2 + $0x8] sm:$0xff]  ;;  %v44_v2 = vld [vmem:[%s577_s2] sm:$0xff] }
   0xe   :  { %384 = vmatprep.subr.mxu0 %v472_v0  ;;  %388 = vmatprep.mubr.msk.f32.mxu0 %vm473_vm0, %v472_v0  ;;  %v42_v3 = vld [vmem:[#allocation2] sm:$0xff]  ;;  %vm63_vm1 = vcmask 130048   ;;  %v50_v4 = vld [vmem:[%s579_s4 + $0x18] sm:$0xff]  ;;  %v49_v5 = vld [vmem:[%s579_s4 + $0x10] sm:$0xff]  ;;  %vm144_vm2 = vcmask 261120   ;;  %s474_s30 = smov 4  }
   0xf   :  { %391 = vmatprep.subr.mxu1 %v472_v0  ;;  %399 = vmatprep.mubr.msk.f32.mxu1 %vm473_vm0, %v472_v0  ;;  %v48_v6 = vld [vmem:[%s579_s4 + $0x8] sm:$0xff]  ;;  %v47_v7 = vld [vmem:[%s579_s4] sm:$0xff]  ;;  %v55_v8 = vld [vmem:[%s581_s6 + $0x18] sm:$0xff]  ;;  %vm341_vm4 = vcmask 31744   ;;  %vm346_vm5 = vcmask 39936  }
  0x10   :  { %385 = vmatpush3.msra.mxu0 %v45_v1  ;;  %392 = vmatpush3.msra.mxu1 %v50_v4  ;;  %v364_v9 = vld [vmem:[%s578_s3] ss:$0 sm:$0xff]  ;;  %v54_v14 = vld [vmem:[%s581_s6 + $0x10] sm:$0xff]  ;;  %v53_v15 = vld [vmem:[%s581_s6 + $0x8] sm:$0xff] }
  0x11   :  { %386 = vmatprep.subr.mxu0 %v472_v0  ;;  %393 = vmatprep.subr.mxu1 %v472_v0  ;;  %v52_v16 = vld [vmem:[%s581_s6] sm:$0xff] }
  0x12   :  { %387 = vmatpush3.msra.mxu0 %v44_v2  ;;  %394 = vmatpush3.msra.mxu1 %v49_v5  ;;  %v43_v17 = vld [vmem:[%s576_s1] sm:$0xff]  ;;  %s475_s1 = smov 124  }
  0x13   :  { %389 = vmatmul.mubr.msk.f32.vlgmr.msra.gmra.mxu0 %vm63_vm1, %v42_v3  ;;  %402 = vmatprep.subr.mxu0 %v472_v0  ;;  %v366_v18 = vld [vmem:[%s580_s5] ss:$0 sm:$0xff]  ;;  %v312_v42 = vmul.f32 -0.5, %v43_v17  ;;  %s476_s5 = smov [#allocation5]  }
  0x14   :  { %410 = vmatprep.mubr.msk.f32.mxu0 %vm473_vm0, %v472_v0  ;;  %395 = vmatprep.subr.mxu1 %v472_v0  ;;  %v368_v23 = vld [vmem:[%s582_s7] ss:$0 sm:$0xff]  ;;  %s355_s6 = sshll.u32 %s476_s5, 4  ;;  %s356_s6 = int_to_ptr.vmem [resolvable:$true] %s355_s6 }
  0x15   :  { %396 = vmatpush3.msra.mxu1 %v48_v6  ;;  %403 = vmatpush3.msra.mxu0 %v55_v8  ;;  %v313_v46 = vmul.f32 %v312_v42, %v43_v17  ;;  %s447_s7 = scalar_lea.vmem %s356_s6, 128  ;;  %p452_p6 = scmp.lt.s32.totalorder %s356_s6, %s356_s6 }
  0x16   :  { %397 = vmatprep.subr.mxu1 %v472_v0  ;;  %404 = vmatprep.subr.mxu0 %v472_v0  ;;  %p448_p5 = scmp.ne.s32.totalorder %s356_s6, %s447_s7  ;;  %p453_p7 = scmp.lt.s32.totalorder %s447_s7, %s447_s7 }
  0x17   :  { %398 = vmatpush3.msra.mxu1 %v47_v7  ;;  %405 = vmatpush3.msra.mxu0 %v54_v14 }
  0x18   :  { %406 = vmatprep.subr.mxu0 %v472_v0  ;;  %303 = vrot.lane.b32.xlu0 %v43_v17, %s474_s30  ;;  %p454_p8 = por %p453_p7, %p452_p6 }
  0x19   :  { %407 = vmatpush3.msra.mxu0 %v53_v15 }
  0x1a   :  { %408 = vmatprep.subr.mxu0 %v472_v0  ;;  %p455_p9 = pnand %p454_p8, %p448_p5 }
  0x1b   :  { %409 = vmatpush3.msra.mxu0 %v52_v16 }
  0x8a   :  { %v304_v30 = vpop.permute.xlu0 %303 }
  0xd3   :  { %v133_v10 = vpop.f32.mrf.mxu0 }
  0xd4   :  { %v134_v11 = vadd.f32 %v364_v9, %v133_v10 }
  0xd5   :  { %v390_v12 = vpop.f32.mrf.mxu0 }
  0xd6   :  { %v137_v13 = vmax.f32 %v134_v11, 0.0 }
  0xd8   :  { %400 = vmatmul.mubr.msk.f32.vlgmr.msra.gmra.mxu1 %vm144_vm2, %v137_v13 }
 0x198   :  { %v214_v19 = vpop.f32.mrf.mxu1 }
 0x199   :  { %v215_v20 = vadd.f32 %v366_v18, %v214_v19 }
 0x19a   :  { %v401_v21 = vpop.f32.mrf.mxu1 }
 0x19b   :  { %v218_v22 = vmax.f32 %v215_v20, 0.0 }
 0x19d   :  { %411 = vmatmul.mubr.msk.f32.vlgmr.msra.gmra.mxu0 %vm144_vm2, %v218_v22 }
 0x25d   :  { %v294_v24 = vpop.f32.mrf.mxu0 }
 0x25e   :  { %v295_v25 = vadd.f32 %v368_v23, %v294_v24 }
 0x25f   :  { %v412_v26 = vpop.f32.mrf.mxu0 }
 0x260   :  { %v298_v27 = vmax.f32 %v295_v25, -20.0 }
 0x262   :  { %v299_v28 = vmin.f32 %v298_v27, 2.0 }
 0x264   :  { %315 = vrot.lane.b32.xlu1 %v299_v28, %s475_s1  ;;  %v300_v29 = vmul.f32 1.442695, %v299_v28 }
 0x266   :  { %419 = vpow2.f32 %v300_v29 }
 0x273   :  { %v420_v31 = vpop.eup %419 }
 0x274   :  { %v306_v32 = vmul.f32 %v420_v31, %v304_v30 }
 0x276   :  { %308 = vrot.lane.b32.xlu0 %v306_v32, %s475_s1 }
 0x2d6   :  { %v316_v47 = vpop.permute.xlu1 %315 }
 0x2d7   :  { %v318_v52 = vsub.f32 %v313_v46, %v316_v47 }
 0x2d9   :  { %v370_v56 = vadd.f32 -0.9189385, %v318_v52 }
 0x2e8   :  { %v309_v33 = vpop.permute.xlu0 %308 }
 0x2e9   :  { %v311_v34 = vadd.f32 %v309_v33, %v295_v25 }
 0x2eb   :  { %v322_v35 = vmul.f32 -2.0, %v311_v34  ;;  %v321_v53 = vsub.f32 0.6931472, %v311_v34 }
 0x2ed   :  { %v324_v36 = vand.u32 2147483647, %v322_v35  ;;  %v323_v50 = vmax.f32 %v322_v35, 0.0 }
 0x2ef   :  { %v325_v37 = vsub.f32 0.0, %v324_v36 }
 0x2f1   :  { %v326_v38 = vmul.f32 1.442695, %v325_v37 }
 0x2f3   :  { %421 = vpow2.f32 %v326_v38 }
 0x300   :  { %v422_v39 = vpop.eup %421 }
 0x301   :  { %v328_v40 = vadd.f32 1.0, %v422_v39  ;;  %v331_v41 = vmul.f32 -0.5, %v422_v39  ;;  %v334_v44 = vand.u32 2147483647, %v422_v39 }
 0x303   :  { %423 = vlog2.f32 %v328_v40  ;;  %v332_v43 = vadd.f32 1.0, %v331_v41  ;;  %vm335_vm3 = vcmp.lt.f32.partialorder %v334_v44, 0.0004427343 }
 0x304   :  { %425 = vtanh.f32 %v311_v34 }
 0x305   :  { %v333_v49 = vmul.f32 %v422_v39, %v332_v43 }
 0x310   :  { %v424_v45 = vpop.eup %423 }
 0x311   :  { %v330_v48 = vmul.f32 0.6931472, %v424_v45  ;;  %v426_v60 = vpop.eup %425 }
 0x313   :  { %v336_v51 = vsel %vm335_vm3, %v333_v49, %v330_v48 }
 0x314   :  { %v337_v54 = vadd.f32 %v336_v51, %v323_v50 }
 0x316   :  { %v338_v55 = vsub.f32 %v321_v53, %v337_v54 }
 0x318   :  { %v339_v57 = vmul.f32 2.0, %v338_v55 }
 0x31a   :  { %v340_v58 = vsub.f32 %v370_v56, %v339_v57 }
 0x31c   :  { %v342_v59 = vsel %vm341_vm4, %v340_v58, 0.0 }
 0x31d   :  { %343 = vadd.xlane.f32.xlu1 %v342_v59 }
 0x3a6   :  { %v344_v61 = vpop.xlane.xlu1 %343 }
 0x3a7   :  { %v345_v62 = vsel %vm341_vm4, %v426_v60, %v344_v61 }
 0x3a8   :  { %v347_v63 = vsel %vm346_vm5, %v345_v62, 0.0 }
 0x3a9   :  { %348 = vst [vmem:[#allocation5] sm:$0xff] %v347_v63 }
 0x3aa   :  { %458 = shalt.err (!%p455_p9)
}
 0x3ab   :  { %358 = dma.vmem_to_hbm [thread:$0]  %s356_s6, 128, %s583_s8, [#allocation4]  }
 0x3ac   :  { %469 = dma.done.wait [#allocation4], 128  }
 0x3ad   :  { %470 = vsyncadd [#allocation4], 4294967168 }
 0x3ae   :  { %362 = vsyncpa [#allocation3], 1 }
 0x3af   :  { %363 = vsyncpa [#allocation4], 1 }

</bundles_post_ra>
